<compile_context>
chip_gen: v7x
topology: tpu7x:2x2x1
jax: 0.10.0
libtpu: 0.0.40
codegen_flags: <defaults>
</compile_context>

<pallas_src>
import jax
import jax.numpy as jnp
from jax import lax
from jax.experimental import pallas as pl
from jax.experimental.pallas import tpu as pltpu


def _linear_kernel(x1_ref, x2_ref, c_ref, s1_ref, out_ref):
    # x1_ref : VMEM (tn, D) tile of x1
    # x2_ref : VMEM (tm, D) tile of x2
    # c_ref  : VMEM (1, D)  center
    # s1_ref : VMEM (1, D)  |signal_variance| / length_scales**2 (x1-side scale)
    # out_ref: VMEM (tn, tm) tile of the covariance matrix
    c = c_ref[...]
    z1 = (x1_ref[...] - c) * s1_ref[...]       # (tn, D), VPU
    z2 = x2_ref[...] - c                       # (tm, D), VPU

    # Contract the last dims of both operands -> MXU matmul with transposed RHS
    # (native MXU weight-load path; no explicit transpose/copy of the x2 tile).
    # HIGHEST precision is free here: with small D the MXU hides under the DMA.
    cross = lax.dot_general(
        z1, z2,
        dimension_numbers=(((1,), (1,)), ((), ())),
        preferred_element_type=jnp.float32,
        precision=lax.Precision.HIGHEST,
    )                                          # (tn, tm)

    out_ref[...] = cross.astype(out_ref.dtype)


def _round_up(a, b):
    return (a + b - 1) // b * b


def linear_kernel_pallas(x1, x2, length_scales, signal_variance, center,
                         *, tn=512, tm=2048):
    """Compute the linear-kernel covariance K(x1, x2) with a Pallas TPU kernel.

    x1: (N, D), x2: (M, D) -> (N, M) float32
    """
    x1 = jnp.asarray(x1, jnp.float32)
    x2 = jnp.asarray(x2, jnp.float32)
    N, D = x1.shape
    M, D2 = x2.shape
    assert D == D2, "feature dims must match"

    ls = jnp.asarray(length_scales, jnp.float32).reshape(1, D)
    center = jnp.asarray(center, jnp.float32).reshape(1, D)
    sv = jnp.abs(jnp.asarray(signal_variance, jnp.float32)).reshape(())
    # Fold |sv| and both 1/length_scale factors into the x1-side per-feature
    # scale: ((x1-c)*sv/ls^2) @ (x2-c)^T == ((x1-c)/ls @ ((x2-c)/ls)^T) * sv.
    scale1 = (sv / (ls * ls)).astype(jnp.float32)

    # Lane-dense tiles: tm multiple of 128 (unmasked vst), tn multiple of 8.
    tn_eff = min(tn, _round_up(N, 8))
    tm_eff = min(tm, _round_up(M, 128))

    # v7x megacore: dimension_semantics=("parallel","parallel") shards the grid
    # across the 2 TensorCores — make sure there are at least 2 tiles of work.
    if pl.cdiv(N, tn_eff) * pl.cdiv(M, tm_eff) < 2:
        if N > 8:
            tn_eff = max(8, _round_up(pl.cdiv(N, 2), 8))
        elif M > 128:
            tm_eff = max(128, _round_up(pl.cdiv(M, 2), 128))

    grid = (pl.cdiv(N, tn_eff), pl.cdiv(M, tm_eff))

    # Zero-pad only the small (rows, D) inputs up to tile multiples so edge
    # blocks never read out of bounds. The (N, M) output is NOT padded: Pallas
    # masks the ragged edge output tiles, so there is no pad+slice round trip
    # over the large result.
    Np = grid[0] * tn_eff
    Mp = grid[1] * tm_eff
    x1p = jnp.pad(x1, ((0, Np - N), (0, 0))) if Np != N else x1
    x2p = jnp.pad(x2, ((0, Mp - M), (0, 0))) if Mp != M else x2

    # Scoped-VMEM budget: double-buffered tiles plus headroom, capped at 64 MiB
    # (v7x per-TC physical). Raises v5e's 16 MiB default when big tiles are used.
    tile_bytes = 4 * (tn_eff * tm_eff + tn_eff * D + tm_eff * D + 2 * D)
    vmem_limit = int(min(max(2 * tile_bytes + (8 << 20), 32 << 20), 64 << 20))

    out = pl.pallas_call(
        _linear_kernel,
        out_shape=jax.ShapeDtypeStruct((N, M), jnp.float32),
        grid_spec=pl.GridSpec(
            grid=grid,
            in_specs=[
                pl.BlockSpec((tn_eff, D), lambda i, j: (i, 0)),   # x1 row tile
                pl.BlockSpec((tm_eff, D), lambda i, j: (j, 0)),   # x2 row tile
                pl.BlockSpec((1, D), lambda i, j: (0, 0)),        # center
                pl.BlockSpec((1, D), lambda i, j: (0, 0)),        # x1-side scale
            ],
            out_specs=pl.BlockSpec((tn_eff, tm_eff), lambda i, j: (i, j)),
        ),
        compiler_params=pltpu.CompilerParams(
            dimension_semantics=("parallel", "parallel"),
            vmem_limit_bytes=vmem_limit,
        ),
    )(x1p, x2p, center, scale1)

    return out


def linear_kernel_ref(x1, x2, length_scales, signal_variance, center):
    """Pure-JAX reference mirroring the PyTorch forward."""
    z1 = (x1 - center) / length_scales
    z2 = (x2 - center) / length_scales
    return (z1 @ z2.T) * jnp.abs(signal_variance)


if __name__ == "__main__":
    # Deterministic parameter init (matches the nn.Parameter constructor args).
    D = 32
    initial_length_scale = 0.7
    initial_signal_variance = 1.3
    length_scales = jnp.ones((D,), jnp.float32) * initial_length_scale
    signal_variance = jnp.array([initial_signal_variance], jnp.float32)
    center = jnp.zeros((D,), jnp.float32)

    key = jax.random.PRNGKey(0)
    k1, k2 = jax.random.split(key)
    N, M = 96, 200  # not tile multiples: exercises ragged-edge masking + the
                    # megacore grid-split path (grid becomes (2, 1))
    x1 = jax.random.normal(k1, (N, D), dtype=jnp.float32)
    x2 = jax.random.normal(k2, (M, D), dtype=jnp.float32)

    out = linear_kernel_pallas(x1, x2, length_scales, signal_variance, center)
    out = jax.block_until_ready(out)

    ref = linear_kernel_ref(x1, x2, length_scales, signal_variance[0], center)
    assert out.shape == (N, M)
    assert jnp.allclose(out, ref, atol=2e-3, rtol=2e-3), "mismatch vs reference"

    print("KERNEL_OK")
</pallas_src>

<mosaic_0001>
module attributes {stable_mosaic.version = 11 : i64} {
  func.func @_linear_kernel(%arg0: i32, %arg1: i32, %arg2: memref<48x32xf32, #tpu.memory_space<vmem>>, %arg3: memref<256x32xf32, #tpu.memory_space<vmem>>, %arg4: memref<1x32xf32, #tpu.memory_space<vmem>>, %arg5: memref<1x32xf32, #tpu.memory_space<vmem>>, %arg6: memref<48x256xf32, #tpu.memory_space<vmem>>) attributes {dimension_semantics = [#tpu.dimension_semantics<parallel>, #tpu.dimension_semantics<parallel>], iteration_bounds = array<i64: 2, 1>, scalar_prefetch = 0 : i64, scratch_operands = 0 : i64, tpu.core_type = #tpu.core_type<tc>, window_params = [{transform_indices = @transform_0, window_bounds = array<i64: 48, 32>}, {transform_indices = @transform_1, window_bounds = array<i64: 256, 32>}, {pipeline_mode = #tpu.pipeline_mode<synchronous>, transform_indices = @transform_2, window_bounds = array<i64: 1, 32>}, {pipeline_mode = #tpu.pipeline_mode<synchronous>, transform_indices = @transform_3, window_bounds = array<i64: 1, 32>}, {transform_indices = @transform_4, window_bounds = array<i64: 48, 256>}]} {
    %c0 = arith.constant 0 : index
    %c0_0 = arith.constant 0 : index
    %0 = vector.load %arg4[%c0, %c0_0] : memref<1x32xf32, #tpu.memory_space<vmem>>, vector<1x32xf32>
    %c0_1 = arith.constant 0 : index
    %c0_2 = arith.constant 0 : index
    %1 = vector.load %arg2[%c0_1, %c0_2] : memref<48x32xf32, #tpu.memory_space<vmem>>, vector<48x32xf32>
    %2 = vector.broadcast %0 : vector<1x32xf32> to vector<48x32xf32>
    %3 = arith.subf %1, %2 : vector<48x32xf32>
    %c0_3 = arith.constant 0 : index
    %c0_4 = arith.constant 0 : index
    %4 = vector.load %arg5[%c0_3, %c0_4] : memref<1x32xf32, #tpu.memory_space<vmem>>, vector<1x32xf32>
    %5 = vector.broadcast %4 : vector<1x32xf32> to vector<48x32xf32>
    %6 = arith.mulf %3, %5 : vector<48x32xf32>
    %c0_5 = arith.constant 0 : index
    %c0_6 = arith.constant 0 : index
    %7 = vector.load %arg3[%c0_5, %c0_6] : memref<256x32xf32, #tpu.memory_space<vmem>>, vector<256x32xf32>
    %8 = vector.broadcast %0 : vector<1x32xf32> to vector<256x32xf32>
    %9 = arith.subf %7, %8 : vector<256x32xf32>
    %cst = arith.constant dense<0.000000e+00> : vector<48x256xf32>
    %10 = tpu.matmul %6, %9, %cst {dimension_numbers = #tpu.dot_dimension_numbers<[1], [1], [0], [0], [0, 0, 1, 0], [], []>, precision = #tpu.contract_precision<fp32>} : vector<48x32xf32>, vector<256x32xf32>, vector<48x256xf32> -> vector<48x256xf32>
    %c0_7 = arith.constant 0 : index
    %c0_8 = arith.constant 0 : index
    %11 = vector.load %arg6[%c0_7, %c0_8] : memref<48x256xf32, #tpu.memory_space<vmem>>, vector<48x256xf32>
    tpu.vector_store %arg6[%c0_7, %c0_8], %10 {strides = array<i32>} : memref<48x256xf32, #tpu.memory_space<vmem>>, vector<48x256xf32>,
    return
  }
  func.func @transform_0(%arg0: i32, %arg1: i32) -> (i32, i32) {
    %c0_i32 = arith.constant 0 : i32
    %c0_i32_0 = arith.constant 0 : i32
    return %arg0, %c0_i32 : i32, i32
  }
  func.func @transform_1(%arg0: i32, %arg1: i32) -> (i32, i32) {
    %c0_i32 = arith.constant 0 : i32
    %c0_i32_0 = arith.constant 0 : i32
    return %arg1, %c0_i32 : i32, i32
  }
  func.func @transform_2(%arg0: i32, %arg1: i32) -> (i32, i32) {
    %c0_i32 = arith.constant 0 : i32
    %c0_i32_0 = arith.constant 0 : i32
    %c0_i32_1 = arith.constant 0 : i32
    return %c0_i32, %c0_i32_0 : i32, i32
  }
  func.func @transform_3(%arg0: i32, %arg1: i32) -> (i32, i32) {
    %c0_i32 = arith.constant 0 : i32
    %c0_i32_0 = arith.constant 0 : i32
    %c0_i32_1 = arith.constant 0 : i32
    return %c0_i32, %c0_i32_0 : i32, i32
  }
  func.func @transform_4(%arg0: i32, %arg1: i32) -> (i32, i32) {
    %c0_i32 = arith.constant 0 : i32
    return %arg0, %arg1 : i32, i32
  }
}

</mosaic_0001>

<bundles_post_ra>
// kernel: tpu_custom_call.1
= control target key start
LH: loop header
LB: loop body
LE: loop exit
PB: predicated region body
PF: predicated region fallthrough
CT: control target
= control target key end

     0   :  { %9 = vsyncpa [#allocation3], 0  ;;  %s3311_s0 = inlined_call_operand.vmem [shape: f32[96,32], index: 0, kind: input, shape index: {}]   ;;  %s3312_s1 = inlined_call_operand.vmem [shape: f32[256,32], index: 1, kind: input, shape index: {}]   ;;  %s3313_s2 = inlined_call_operand.vmem [shape: f32[1,32], index: 2, kind: input, shape index: {}]   ;;  %s3314_s3 = inlined_call_operand.vmem [shape: f32[1,32], index: 3, kind: input, shape index: {}]   ;;  %s3315_s4 = inlined_call_operand.hbm [shape: f32[96,200], index: 4, kind: output, shape index: {}]  }
   0x1   :  { %11 = vsyncpa [#allocation3 + $0x1], 0  ;;  %s2362_s15 = smov 0   ;;  %s2364_s16 = smov 0  }
   0x2   :  { %s2366_s17 = smov 0   ;;  %s2368_s18 = smov 0  }
   0x3   :  { %s2370_s19 = smov 0   ;;  %s2372_s20 = smov 0  }
   0x4 LB: > { %s1664_s21 = sadd.s32 4294967295, %s2332_s20   ;;  %s1665_s22 = sadd.s32 4294967294, %s2332_s20   ;;  %s2332_s20 = sphi %s2372_s20, %s17_s20   ;;  %s2328_s19 = sphi %s2370_s19, %s3452_s19   ;;  %s2324_s18 = sphi %s2368_s18, %s3451_s18   ;;  %s2320_s17 = sphi %s2366_s17, %s3450_s17   ;;  %s2316_s16 = sphi %s2364_s16, %s3449_s16   ;;  %s2312_s15 = sphi %s2362_s15, %s3448_s15  }
   0x5   : > { %s29_s23 = sadd.s32 1, %s2328_s19  ;;  %s132_s24 = sadd.s32 1, %s2320_s17 }
   0x6   : > { %p31_p0 = scmp.ge.s32.totalorder %s29_s23, 2  ;;  %p142_p1 = scmp.ne.s32.totalorder %s2320_s17, %s2316_s16 }
   0x7   : > { %p143_p2 = scmp.eq.s32.totalorder %s1664_s21, 1  ;;  %p148_p3 = scmp.ne.s32.totalorder %s2316_s16, %s2312_s15 }
   0x8   : > { %s3454_s23 = smov (%p31_p0, %s29_s23), 0  ;;  %p149_p5 = scmp.eq.s32.totalorder %s1665_s22, 1 }
   0x9   : > { %p2402_p4 = por %p143_p2, %p142_p1  ;;  %s127_s26 = ssub.s32 %s2328_s19, %s3454_s23 }
   0xa   : > { %p1669_p6 = scmp.ge.s32.totalorder %s2332_s20, 1  ;;  %p130_p7 = scmp.eq.s32.totalorder %s127_s26, 0 }
   0xb   : > { %p2409_p8 = por %p149_p5, %p148_p3  ;;  %p191_p9 = scmp.lt.s32.totalorder %s2332_s20, 3 }
   0xc   : > { %s2415_s28 = scalar_select %p130_p7, %s2320_s17, %s132_s24  }
   0xd   : > { %p192_p10 = pnand %p1669_p6, %p191_p9 }
   0xf   : > { %195 = sbr.rel (%p192_p10) target bundleno = 473 (0x1d9), region = 36 }
  0x16   : > { %v2420_v0 = vld [vmem:[%s3313_s2] ss:$0 sm:$0xff]  ;;  %v285_v2 = vld [vmem:[%s3312_s1 + $0x88] sm:$0xff]  ;;  %vm332_vm0 = vcmask 261120   ;;  %v286_v7 = vld [vmem:[%s3312_s1 + $0x90] sm:$0xff]  ;;  %s222_s5 = smul.u32 6, %s2324_s18 }
  0x17   : > { %v284_v1 = vld [vmem:[%s3312_s1 + $0x80] sm:$0xff]  ;;  %v317_v4 = vsub.f32 %v285_v2, %v2420_v0  ;;  %v269_v6 = vld [vmem:[%s3312_s1 + $0x8] sm:$0xff]  ;;  %v287_v10 = vld [vmem:[%s3312_s1 + $0x98] sm:$0xff]  ;;  %v318_v11 = vsub.f32 %v286_v7, %v2420_v0  ;;  %s1679_s21 = smul.u32 1536, %s2324_s18 }
  0x18   : > { %v316_v3 = vsub.f32 %v284_v1, %v2420_v0  ;;  %v268_v5 = vld [vmem:[%s3312_s1] sm:$0xff]  ;;  %v301_v9 = vsub.f32 %v269_v6, %v2420_v0  ;;  %v270_v12 = vld [vmem:[%s3312_s1 + $0x10] sm:$0xff]  ;;  %v319_v15 = vsub.f32 %v287_v10, %v2420_v0  ;;  %v271_v25 = vld [vmem:[%s3312_s1 + $0x18] sm:$0xff]  ;;  %p223_p11 = scmp.lt.s32.totalorder %s222_s5, 11 }
  0x19   : > { %v300_v8 = vsub.f32 %v268_v5, %v2420_v0  ;;  %v2452_v14 = vsel %vm332_vm0, %v317_v4, 0  ;;  %v302_v16 = vsub.f32 %v270_v12, %v2420_v0  ;;  %v2467_v23 = vsel %vm332_vm0, %v318_v11, 0  ;;  %v288_v26 = vld [vmem:[%s3312_s1 + $0xa0] sm:$0xff]  ;;  %v289_v29 = vld [vmem:[%s3312_s1 + $0xa8] sm:$0xff]  ;;  %v290_v40 = vld [vmem:[%s3312_s1 + $0xb0] sm:$0xff]  ;;  %s3257_s29 = scalar_lea.hbm %s3315_s4, %s1679_s21 }
  0x1a   : > { %v2449_v13 = vsel %vm332_vm0, %v316_v3, 0  ;;  %v499_v18 = vand.u32 4294901760, %v2452_v14  ;;  %v2462_v20 = vsel %vm332_vm0, %v301_v9, 0  ;;  %v2470_v24 = vsel %vm332_vm0, %v319_v15, 0  ;;  %v272_v32 = vld [vmem:[%s3312_s1 + $0x20] sm:$0xff]  ;;  %v273_v33 = vld [vmem:[%s3312_s1 + $0x28] sm:$0xff] }
  0x1b   : > { %v496_v17 = vand.u32 4294901760, %v2449_v13  ;;  %v2459_v19 = vsel %vm332_vm0, %v300_v8, 0  ;;  %v451_v22 = vand.u32 4294901760, %v2462_v20  ;;  %v502_v28 = vand.u32 4294901760, %v2467_v23  ;;  %v291_v48 = vld [vmem:[%s3312_s1 + $0xb8] sm:$0xff]  ;;  %v274_v57 = vld [vmem:[%s3312_s1 + $0x30] sm:$0xff] }
  0x1c   : > { %v448_v21 = vand.u32 4294901760, %v2459_v19  ;;  %v505_v31 = vand.u32 4294901760, %v2470_v24  ;;  %v303_v34 = vsub.f32 %v271_v25, %v2420_v0  ;;  %v2505_v35 = vsel %vm332_vm0, %v302_v16, 0  ;;  %v275_v58 = vld [vmem:[%s3312_s1 + $0x38] sm:$0xff]  ;;  %v292_v60 = vld [vmem:[%s3312_s1 + $0xc0] sm:$0xff]  ;;  %v293_v61 = vld [vmem:[%s3312_s1 + $0xc8] sm:$0xff] }
  0x1d   : > { %v2482_v27 = vpack.c.bf16 %v499_v18, %v496_v17  ;;  %v320_v36 = vsub.f32 %v288_v26, %v2420_v0  ;;  %v454_v38 = vand.u32 4294901760, %v2505_v35  ;;  %v321_v39 = vsub.f32 %v289_v29, %v2420_v0  ;;  %v276_v15 = vld [vmem:[%s3312_s1 + $0x40] sm:$0xff]  ;;  %v277_v16 = vld [vmem:[%s3312_s1 + $0x48] sm:$0xff]  ;;  %s3456_s5 = smov (!%p223_p11, %s222_s5), 11  ;;  %v294_v25 = vld [vmem:[%s3312_s1 + $0xd0] sm:$0xff] }
  0x1e   : > { %v2492_v30 = vpack.c.bf16 %v451_v22, %v448_v21  ;;  %v2514_v37 = vpack.c.bf16 %v505_v31, %v502_v28  ;;  %v2522_v41 = vsel %vm332_vm0, %v303_v34, 0  ;;  %v304_v43 = vsub.f32 %v272_v32, %v2420_v0  ;;  %v295_v26 = vld [vmem:[%s3312_s1 + $0xd8] sm:$0xff]  ;;  %s1670_s26 = sshll.u32 %s3456_s5, 3  ;;  %s2334_s5 = smov [#allocation2]  }
  0x1f   : > { %3365 = vst [vmem:[#allocation5_spill] sm:$0xff] %v2482_v27  ;;  %1945 = vmatprep.subr.bf16.mxu1 %v2482_v27  ;;  %2041 = vmatprep.subr.bf16.mxu0 %v2482_v27  ;;  %v2525_v42 = vsel %vm332_vm0, %v320_v36, 0  ;;  %v305_v44 = vsub.f32 %v273_v33, %v2420_v0  ;;  %v457_v45 = vand.u32 4294901760, %v2522_v41  ;;  %v2533_v46 = vsel %vm332_vm0, %v321_v39, 0  ;;  %s2663_s7 = scalar_lea.vmem %s3311_s0, %s1670_s26  ;;  %s2258_s6 = sshll.u32 %s2334_s5, 4  ;;  %s2259_s6 = int_to_ptr.vmem [resolvable:$false] %s2258_s6 }
  0x20   : > { %3366 = vst [vmem:[#allocation6_spill] sm:$0xff] %v2492_v30  ;;  %1947 = vmatpush3.bf16.xpose.msra.mxu1 %v2492_v30  ;;  %2043 = vmatpush3.bf16.xpose.msra.mxu0 %v2492_v30  ;;  %3367 = vst [vmem:[#allocation7_spill] sm:$0xff] %v2514_v37  ;;  %v508_v47 = vand.u32 4294901760, %v2525_v42  ;;  %v511_v49 = vand.u32 4294901760, %v2533_v46  ;;  %v322_v50 = vsub.f32 %v290_v40, %v2420_v0  ;;  %v2554_v53 = vsel %vm332_vm0, %v304_v43, 0  ;;  %v238_v30 = vld [vmem:[%s2663_s7 + $0x8] sm:$0xff] }
  0x21   : > { %1949 = vmatprep.subr.bf16.mxu1 %v2514_v37  ;;  %2045 = vmatprep.subr.bf16.mxu0 %v2514_v37  ;;  %v2545_v51 = vpack.c.bf16 %v457_v45, %v454_v38  ;;  %v2557_v54 = vsel %vm332_vm0, %v305_v44, 0  ;;  %v323_v55 = vsub.f32 %v291_v48, %v2420_v0  ;;  %v3327_v62 = vand.u32 4294901760, %v2554_v53  ;;  %s2260_s8 = scalar_lea.vmem %s2259_s6, 3072 }
  0x22   : > { %v2551_v52 = vpack.c.bf16 %v511_v49, %v508_v47  ;;  %v2561_v56 = vsel %vm332_vm0, %v322_v50, 0  ;;  %v3326_v63 = vand.u32 4294901760, %v2557_v54  ;;  %v306_v3 = vsub.f32 %v274_v57, %v2420_v0  ;;  %v278_v57 = vld [vmem:[%s3312_s1 + $0x50] sm:$0xff] }
  0x23   : > { %3368 = vst [vmem:[#allocation8_spill] sm:$0xff] %v2545_v51  ;;  %v2571_v59 = vsel %vm332_vm0, %v323_v55, 0  ;;  %v3325_v1 = vand.u32 4294901760, %v2561_v56  ;;  %v307_v4 = vsub.f32 %v275_v58, %v2420_v0  ;;  %v324_v5 = vsub.f32 %v292_v60, %v2420_v0 }
  0x24   : > { %3369 = vst [vmem:[#allocation9_spill] sm:$0xff] %v2551_v52  ;;  %v3324_v2 = vand.u32 4294901760, %v2571_v59  ;;  %v325_v6 = vsub.f32 %v293_v61, %v2420_v0  ;;  %v2595_v7 = vpack.c.bf16 %v3326_v63, %v3327_v62  ;;  %v2604_v9 = vsel %vm332_vm0, %v306_v3, 0  ;;  %v279_v61 = vld [vmem:[%s3312_s1 + $0x58] sm:$0xff]  ;;  %v296_v3 = vld [vmem:[%s3312_s1 + $0xe0] sm:$0xff] }
  0x25   : > { %v2607_v10 = vsel %vm332_vm0, %v307_v4, 0  ;;  %v2610_v11 = vsel %vm332_vm0, %v324_v5, 0  ;;  %v3323_v29 = vand.u32 4294901760, %v2604_v9  ;;  %v308_v36 = vsub.f32 %v276_v15, %v2420_v0  ;;  %v297_v4 = vld [vmem:[%s3312_s1 + $0xe8] sm:$0xff] }
  0x26   : > { %3370 = vst [vmem:[#allocation10_spill] sm:$0xff] %v2595_v7  ;;  %v2601_v8 = vpack.c.bf16 %v3324_v2, %v3325_v1  ;;  %v2613_v12 = vsel %vm332_vm0, %v325_v6, 0  ;;  %v3322_v32 = vand.u32 4294901760, %v2607_v10  ;;  %v3317_v33 = vand.u32 4294901760, %v2610_v11 }
  0x27   : > { %v3316_v34 = vand.u32 4294901760, %v2613_v12  ;;  %v309_v39 = vsub.f32 %v277_v16, %v2420_v0  ;;  %v326_v40 = vsub.f32 %v294_v25, %v2420_v0  ;;  %v327_v43 = vsub.f32 %v295_v26, %v2420_v0  ;;  %v237_v16 = vld [vmem:[%s2663_s7] sm:$0xff] }
  0x28   : > { %1951 = vmatpush3.bf16.xpose.msra.mxu1 %v2545_v51  ;;  %2047 = vmatpush3.bf16.xpose.msra.mxu0 %v2545_v51  ;;  %3371 = vst [vmem:[#allocation11_spill] sm:$0xff] %v2601_v8  ;;  %v2643_v44 = vpack.c.bf16 %v3322_v32, %v3323_v29  ;;  %v2652_v50 = vsel %vm332_vm0, %v308_v36, 0  ;;  %v310_v15 = vsub.f32 %v278_v57, %v2420_v0 }
  0x29   : > { %1953 = vmatprep.subr.bf16.mxu1 %v2551_v52  ;;  %2049 = vmatprep.subr.bf16.mxu0 %v2551_v52  ;;  %v2649_v48 = vpack.c.bf16 %v3316_v34, %v3317_v33  ;;  %v2655_v55 = vsel %vm332_vm0, %v309_v39, 0  ;;  %v2666_v58 = vsel %vm332_vm0, %v326_v40, 0  ;;  %v2669_v60 = vsel %vm332_vm0, %v327_v43, 0  ;;  %v2696_v43 = vld [vmem:[%s3314_s3] ss:$0 sm:$0xff] }
  0x2a   : > { %3372 = vst [vmem:[#allocation12_spill] sm:$0xff] %v2643_v44  ;;  %v3319_v5 = vand.u32 4294901760, %v2652_v50  ;;  %v3318_v6 = vand.u32 4294901760, %v2655_v55  ;;  %v3321_v25 = vand.u32 4294901760, %v2666_v58  ;;  %v3320_v26 = vand.u32 4294901760, %v2669_v60 }
  0x2b   : > { %3373 = vst [vmem:[#allocation13_spill] sm:$0xff] %v2649_v48  ;;  %v311_v36 = vsub.f32 %v279_v61, %v2420_v0  ;;  %v328_v39 = vsub.f32 %v296_v3, %v2420_v0  ;;  %v329_v40 = vsub.f32 %v297_v4, %v2420_v0  ;;  %v249_v57 = vsub.f32 %v237_v16, %v2420_v0  ;;  %v280_v4 = vld [vmem:[%s3312_s1 + $0x60] sm:$0xff]  ;;  %v281_v16 = vld [vmem:[%s3312_s1 + $0x68] sm:$0xff] }
  0x2c   : > { %v2703_v34 = vpack.c.bf16 %v3318_v6, %v3319_v5  ;;  %v2706_v33 = vsel %vm332_vm0, %v310_v15, 0  ;;  %v2712_v61 = vpack.c.bf16 %v3320_v26, %v3321_v25  ;;  %v299_v25 = vld [vmem:[%s3312_s1 + $0xf8] sm:$0xff]  ;;  %v2748_v2 = vsub.f32 %v2449_v13, %v496_v17 }
  0x2d   : > { %v2715_v3 = vsel %vm332_vm0, %v311_v36, 0  ;;  %v262_v15 = vmul.f32 %v2696_v43, %v249_v57  ;;  %v2725_v6 = vsel %vm332_vm0, %v328_v39, 0  ;;  %v2728_v5 = vsel %vm332_vm0, %v329_v40, 0  ;;  %v298_v36 = vld [vmem:[%s3312_s1 + $0xf0] sm:$0xff] }
  0x2e   : > { %3374 = vst [vmem:[#allocation14_spill] sm:$0xff] %v2703_v34  ;;  %3375 = vst [vmem:[#allocation15_spill] sm:$0xff] %v2712_v61  ;;  %v3330_v26 = vand.u32 4294901760, %v2706_v33  ;;  %v3329_v39 = vand.u32 4294901760, %v2715_v3  ;;  %v312_v40 = vsub.f32 %v280_v4, %v2420_v0  ;;  %v313_v57 = vsub.f32 %v281_v16, %v2420_v0 }
  0x2f   : > { %v334_v32 = vsel %vm332_vm0, %v262_v15, 0  ;;  %v532_v15 = vand.u32 4294901760, %v2725_v6  ;;  %v3328_v1 = vand.u32 4294901760, %v2728_v5  ;;  %v2757_v4 = vsub.f32 %v2452_v14, %v499_v18 }
  0x30   : > { %1955 = vmatpush3.bf16.xpose.msra.mxu1 %v2595_v7  ;;  %2051 = vmatpush3.bf16.xpose.msra.mxu0 %v2595_v7  ;;  %v2743_v29 = vand.u32 4294901760, %v334_v32  ;;  %v330_v16 = vsub.f32 %v298_v36, %v2420_v0  ;;  %v331_v63 = vsub.f32 %v299_v25, %v2420_v0  ;;  %v2767_v17 = vsub.f32 %v2459_v19, %v448_v21 }
  0x31   : > { %1957 = vmatprep.subr.bf16.mxu1 %v2601_v8  ;;  %2053 = vmatprep.subr.bf16.mxu0 %v2601_v8  ;;  %v2772_v62 = vsub.f32 %v2462_v20, %v451_v22  ;;  %v2777_v14 = vsub.f32 %v2467_v23, %v502_v28  ;;  %v2782_v18 = vsub.f32 %v2470_v24, %v505_v31  ;;  %v388_v21 = vsel %vm332_vm0, %v312_v40, 0 }
  0x32   : > { %3376 = vst [vmem:[#allocation16_spill] sm:$0xff] %v2743_v29  ;;  %v2762_v13 = vsub.f32 %v334_v32, %v2743_v29  ;;  %v2788_v19 = vpack.c.bf16 %v3329_v39, %v3330_v26  ;;  %v391_v20 = vsel %vm332_vm0, %v313_v57, 0  ;;  %v2798_v23 = vsub.f32 %v2505_v35, %v454_v38  ;;  %v282_v32 = vld [vmem:[%s3312_s1 + $0x70] sm:$0xff] }
  0x33   : > { %v2803_v24 = vsub.f32 %v2522_v41, %v457_v45  ;;  %v2808_v28 = vsub.f32 %v2525_v42, %v508_v47  ;;  %v2812_v31 = vpack.c.bf16 %v3328_v1, %v532_v15  ;;  %v2820_v35 = vsub.f32 %v2533_v46, %v511_v49  ;;  %v283_v42 = vld [vmem:[%s3312_s1 + $0x78] sm:$0xff] }
  0x34   : > { %3377 = vst [vmem:[#allocation17_spill] sm:$0xff] %v2762_v13  ;;  %3378 = vst [vmem:[#allocation18_spill] sm:$0xff] %v2788_v19  ;;  %v2793_v22 = vand.u32 4294901760, %v2762_v13  ;;  %v442_v38 = vsel %vm332_vm0, %v330_v16, 0  ;;  %v445_v41 = vsel %vm332_vm0, %v331_v63, 0  ;;  %v3380_v47 = vand.u32 4294901760, %v2554_v53 }
  0x35   : > { %3379 = vst [vmem:[#allocation19_spill] sm:$0xff] %v2812_v31  ;;  %v484_v46 = vand.u32 4294901760, %v388_v21  ;;  %v487_v49 = vand.u32 4294901760, %v391_v20  ;;  %v725_v36 = vand.u32 4294901760, %v2748_v2  ;;  %v3381_v63 = vand.u32 4294901760, %v2557_v54 }
  0x36   : > { %v547_v45 = vsub.f32 %v2762_v13, %v2793_v22  ;;  %1844 = vmatprep.mubr.f32.mxu0 %v2793_v22  ;;  %v2833_v25 = vsub.f32 %v2554_v53, %v3380_v47  ;;  %v314_v57 = vsub.f32 %v282_v32, %v2420_v0  ;;  %v732_v53 = vand.u32 4294901760, %v2757_v4 }
  0x37   : > { %v2839_v40 = vsub.f32 %v2557_v54, %v3381_v63  ;;  %v3382_v47 = vand.u32 4294901760, %v2561_v56  ;;  %v538_v54 = vand.u32 4294901760, %v442_v38  ;;  %v541_v63 = vand.u32 4294901760, %v445_v41 }
  0x38   : > { %1959 = vmatpush3.bf16.xpose.msra.mxu1 %v2643_v44  ;;  %2055 = vmatpush3.bf16.xpose.msra.mxu0 %v2643_v44  ;;  %v2844_v16 = vand.u32 4294901760, %v547_v45  ;;  %v315_v39 = vsub.f32 %v283_v42, %v2420_v0  ;;  %v3383_v26 = vand.u32 4294901760, %v2571_v59  ;;  %v3384_v45 = vand.u32 4294901760, %v2604_v9 }
  0x39   : > { %1961 = vmatprep.subr.bf16.mxu1 %v2649_v48  ;;  %2057 = vmatprep.subr.bf16.mxu0 %v2649_v48  ;;  %v2850_v1 = vsub.f32 %v2561_v56, %v3382_v47  ;;  %v3385_v56 = vand.u32 4294901760, %v2607_v10  ;;  %v2903_v48 = vpack.c.bf16 %v541_v63, %v538_v54  ;;  %v3393_v44 = vand.u32 4294901760, %v2669_v60 }
  0x3a   : > { %v2858_v32 = vsub.f32 %v2571_v59, %v3383_v26  ;;  %1712 = vmatprep.mubr.f32.mxu1 %v2844_v16  ;;  %v3387_v59 = vand.u32 4294901760, %v2613_v12  ;;  %v3394_v8 = vand.u32 4294901760, %v2706_v33  ;;  %v627_v51 = vand.u32 4294901760, %v2798_v23 }
  0x3b   : > { %v2868_v47 = vsub.f32 %v2607_v10, %v3385_v56  ;;  %v726_v10 = vsub.f32 %v2748_v2, %v725_v36  ;;  %v394_v56 = vsel %vm332_vm0, %v314_v57, 0  ;;  %3392 = vst [vmem:[#allocation21_spill] sm:$0xff] %v2903_v48  ;;  %v397_v57 = vsel %vm332_vm0, %v315_v39, 0 }
  0x3c   : > { %v2879_v26 = vsub.f32 %v2613_v12, %v3387_v59  ;;  %v3390_v12 = vand.u32 4294901760, %v2655_v55  ;;  %v2909_v13 = vsub.f32 %v2669_v60, %v3393_v44  ;;  %v2914_v7 = vsub.f32 %v2706_v33, %v3394_v8 }
  0x3d   : > { %v490_v39 = vand.u32 4294901760, %v394_v56  ;;  %v727_v52 = vand.u32 4294901760, %v726_v10  ;;  %v746_v44 = vand.u32 4294901760, %v2782_v18  ;;  %v493_v8 = vand.u32 4294901760, %v397_v57 }
  0x3e   : > { %v2896_v59 = vsub.f32 %v2655_v55, %v3390_v12  ;;  %v3395_v55 = vand.u32 4294901760, %v2715_v3  ;;  %v2937_v10 = vsub.f32 %v391_v20, %v487_v49  ;;  %v634_v37 = vand.u32 4294901760, %v2803_v24 }
  0x3f   : > { %v2072_v20 = vpack.c.bf16 %v732_v53, %v725_v36  ;;  %v753_v27 = vand.u32 4294901760, %v2808_v28  ;;  %v760_v29 = vand.u32 4294901760, %v2820_v35  ;;  %v628_v36 = vsub.f32 %v2798_v23, %v627_v51 }
  0x40   : > { %1963 = vmatpush3.bf16.xpose.msra.mxu1 %v2703_v34  ;;  %2059 = vmatpush3.bf16.xpose.msra.mxu0 %v2703_v34  ;;  %v620_v34 = vand.u32 4294901760, %v2772_v62  ;;  %v2919_v12 = vsub.f32 %v2715_v3, %v3395_v55  ;;  %v3396_v55 = vand.u32 4294901760, %v2728_v5  ;;  %3397 = vst [vmem:[#allocation22_spill] sm:$0xff] %v2937_v10 }
  0x41   : > { %1965 = vmatprep.subr.bf16.mxu1 %v2712_v61  ;;  %2061 = vmatprep.subr.bf16.mxu0 %v2712_v61 }
  0x42   : > { %v621_v3 = vsub.f32 %v2772_v62, %v620_v34 }
  0x48   : > { %1967 = vmatpush3.bf16.xpose.msra.mxu1 %v2788_v19  ;;  %2063 = vmatpush3.bf16.xpose.msra.mxu0 %v2788_v19  ;;  %v2863_v19 = vsub.f32 %v2604_v9, %v3384_v45  ;;  %v3388_v9 = vand.u32 4294901760, %v2652_v50  ;;  %v2886_v45 = vpack.c.bf16 %v487_v49, %v484_v46  ;;  %v2953_v49 = vpack.c.bf16 %v493_v8, %v490_v39 }
  0x49   : > { %1969 = vmatprep.subr.bf16.mxu1 %v2812_v31  ;;  %2065 = vmatprep.subr.bf16.mxu0 %v2812_v31  ;;  %v3386_v31 = vand.u32 4294901760, %v2610_v11 }
  0x4a   : > { %v2884_v42 = vsub.f32 %v2652_v50, %v3388_v9  ;;  %3389 = vst [vmem:[#allocation20_spill] sm:$0xff] %v2886_v45  ;;  %v3391_v50 = vand.u32 4294901760, %v2666_v58  ;;  %3400 = vst [vmem:[#allocation25_spill] sm:$0xff] %v2953_v49 }
  0x4b   : > { %v2873_v61 = vsub.f32 %v2610_v11, %v3386_v31  ;;  %v733_v11 = vsub.f32 %v2757_v4, %v732_v53  ;;  %v613_v31 = vand.u32 4294901760, %v2767_v17  ;;  %v635_v53 = vsub.f32 %v2803_v24, %v634_v37 }
  0x4c   : > { %v2901_v9 = vsub.f32 %v2666_v58, %v3391_v50  ;;  %v739_v58 = vand.u32 4294901760, %v2777_v14  ;;  %v2923_v50 = vsub.f32 %v2725_v6, %v532_v15  ;;  %v2933_v6 = vsub.f32 %v2728_v5, %v3396_v55  ;;  %v239_v5 = vld [vmem:[%s2663_s7 + $0x10] sm:$0xff] }
  0x4d   : > { %v734_v33 = vand.u32 4294901760, %v733_v11  ;;  %v614_v60 = vsub.f32 %v2767_v17, %v613_v31  ;;  %v2935_v15 = vsub.f32 %v388_v21, %v484_v46  ;;  %v2948_v55 = vsub.f32 %v445_v41, %v541_v63  ;;  %v240_v41 = vld [vmem:[%s2663_s7 + $0x18] sm:$0xff] }
  0x4e   : > { %v740_v11 = vsub.f32 %v2777_v14, %v739_v58  ;;  %v2950_v21 = vsub.f32 %v394_v56, %v490_v39  ;;  %v747_v46 = vsub.f32 %v2782_v18, %v746_v44  ;;  %v251_v10 = vsub.f32 %v239_v5, %v2420_v0 }
  0x4f   : > { %v2074_v63 = vpack.c.bf16 %v620_v34, %v613_v31  ;;  %v648_v31 = vand.u32 4294901760, %v2839_v40  ;;  %v761_v5 = vsub.f32 %v2820_v35, %v760_v29 }
  0x50   : > { %1971 = vmatpush3.bf16.xpose.msra.mxu1 %v2886_v45  ;;  %2067 = vmatpush3.bf16.xpose.msra.mxu0 %v2886_v45  ;;  %v2941_v45 = vsub.f32 %v442_v38, %v538_v54  ;;  %3399 = vst [vmem:[#allocation24_spill] sm:$0xff] %v2950_v21  ;;  %v1976_v38 = vpack.c.bf16 %v734_v33, %v727_v52  ;;  %v615_v54 = vand.u32 4294901760, %v614_v60  ;;  %v741_v56 = vand.u32 4294901760, %v740_v11 }
  0x51   : > { %1973 = vmatprep.subr.bf16.mxu1 %v2903_v48  ;;  %2069 = vmatprep.subr.bf16.mxu0 %v2903_v48  ;;  %v622_v48 = vand.u32 4294901760, %v621_v3  ;;  %v748_v39 = vand.u32 4294901760, %v747_v46  ;;  %v641_v52 = vand.u32 4294901760, %v2833_v25  ;;  %v264_v60 = vmul.f32 %v2696_v43, %v251_v10  ;;  %v241_v46 = vld [vmem:[%s2663_s7 + $0x20] sm:$0xff] }
  0x52   : > { %3398 = vst [vmem:[#allocation23_spill] sm:$0xff] %v2941_v45  ;;  %v250_v45 = vsub.f32 %v238_v30, %v2420_v0  ;;  %v2966_v30 = vsub.f32 %v397_v57, %v493_v8  ;;  %v252_v3 = vsub.f32 %v240_v41, %v2420_v0  ;;  %v754_v11 = vsub.f32 %v2808_v28, %v753_v27 }
  0x53   : > { %v1978_v34 = vpack.c.bf16 %v622_v48, %v615_v54  ;;  %v340_v10 = vsel %vm332_vm0, %v264_v60, 0  ;;  %v2076_v57 = vpack.c.bf16 %v746_v44, %v739_v58  ;;  %v2976_v8 = vpack.c.bf16 %v634_v37, %v627_v51 }
  0x54   : > { %v263_v33 = vmul.f32 %v2696_v43, %v250_v45  ;;  %3401 = vst [vmem:[#allocation26_spill] sm:$0xff] %v2966_v30  ;;  %v2980_v48 = vand.u32 4294901760, %v340_v10  ;;  %v1980_v54 = vpack.c.bf16 %v748_v39, %v741_v56  ;;  %v629_v41 = vand.u32 4294901760, %v628_v36 }
  0x55   : > { %v265_v60 = vmul.f32 %v2696_v43, %v252_v3  ;;  %v253_v37 = vsub.f32 %v241_v46, %v2420_v0  ;;  %v755_v51 = vand.u32 4294901760, %v754_v11  ;;  %v762_v58 = vand.u32 4294901760, %v761_v5 }
  0x56   : > { %v337_v45 = vsel %vm332_vm0, %v263_v33, 0  ;;  %v2987_v33 = vsub.f32 %v340_v10, %v2980_v48  ;;  %v2080_v44 = vpack.c.bf16 %v760_v29, %v753_v27  ;;  %v649_v21 = vsub.f32 %v2839_v40, %v648_v31 }
  0x57   : > { %v266_v39 = vmul.f32 %v2696_v43, %v253_v37  ;;  %v767_v27 = vand.u32 4294901760, %v2850_v1  ;;  %v3356_v37 = vand.u32 4294901760, %v2873_v61 }
  0x58   : > { %1975 = vmatpush3.bf16.xpose.msra.mxu1 %v2953_v49  ;;  %2071 = vmatpush3.bf16.xpose.msra.mxu0 %v2953_v49  ;;  %v2978_v49 = vand.u32 4294901760, %v337_v45  ;;  %v568_v36 = vand.u32 4294901760, %v2987_v33 }
  0x59   : > { %1977 = vmatprep.subr.bf16.mxu1 %v1976_v38  ;;  %2073 = vmatprep.subr.bf16.mxu0 %v2072_v20  ;;  %v636_v38 = vand.u32 4294901760, %v635_v53  ;;  %v642_v20 = vsub.f32 %v2833_v25, %v641_v52  ;;  %v343_v53 = vsel %vm332_vm0, %v265_v60, 0  ;;  %v346_v46 = vsel %vm332_vm0, %v266_v39, 0 }
  0x5a   : > { %v2984_v30 = vsub.f32 %v337_v45, %v2978_v49  ;;  %v2998_v45 = vpack.c.bf16 %v648_v31, %v641_v52  ;;  %v3001_v29 = vand.u32 4294901760, %v343_v53  ;;  %v569_v10 = vsub.f32 %v2987_v33, %v568_v36 }
  0x5b   : > { %v1982_v3 = vpack.c.bf16 %v636_v38, %v629_v41  ;;  %v643_v11 = vand.u32 4294901760, %v642_v20  ;;  %v3010_v31 = vand.u32 4294901760, %v346_v46  ;;  %v242_v41 = vld [vmem:[%s2663_s7 + $0x28] sm:$0xff]  ;;  %s219_s7 = sand.u32 1, %s2316_s16  }
  0x5c   : > { %v557_v56 = vand.u32 4294901760, %v2984_v30  ;;  %v3008_v52 = vsub.f32 %v343_v53, %v3001_v29  ;;  %v570_v20 = vand.u32 4294901760, %v569_v10  ;;  %s2196_s13 = smul.u32 96, %s219_s7  ;;  %s3265_s18 = scalar_lea.sflag [#allocation3], %s219_s7 }
  0x5d   : > { %v3020_v60 = vsub.f32 %v346_v46, %v3010_v31 }
  0x5e   : > { %v558_v5 = vsub.f32 %v2984_v30, %v557_v56  ;;  %3402 = vst [vmem:[#allocation27_spill] sm:$0xff] %v3008_v52  ;;  %s3240_s14 = scalar_lea.vmem [#allocation2], %s2196_s13 }
  0x5f   : > { %1713 = vmatmul.mubr.f32.vlgmr.msra.gmra.mrb[0].mxu1 %v2844_v16  ;;  %1845 = vmatmul.mubr.f32.vlgmr.msra.gmra.mrb[0].mxu0 %v2793_v22  ;;  %v650_v22 = vand.u32 4294901760, %v649_v21  ;;  %v774_v16 = vand.u32 4294901760, %v2858_v32  ;;  %v662_v21 = vand.u32 4294901760, %v2868_v47  ;;  %3403 = vst [vmem:[#allocation28_spill] sm:$0xff] %v3020_v60  ;;  %v590_v10 = vand.u32 4294901760, %v3020_v60  ;;  %s1576_s22 = sshll.u32 %s3240_s14, 4  ;;  %s3259_s22 = int_to_ptr.vmem [resolvable:$true] %s1576_s22 }
  0x60   : > { %1979 = vmatpush3.bf16.xpose.msra.mxu1 %v1978_v34  ;;  %2075 = vmatpush3.bf16.xpose.msra.mxu0 %v2074_v63  ;;  %v1984_v34 = vpack.c.bf16 %v762_v58, %v755_v51  ;;  %v3355_v63 = vand.u32 4294901760, %v2863_v19  ;;  %v559_v38 = vand.u32 4294901760, %v558_v5  ;;  %v254_v51 = vsub.f32 %v242_v41, %v2420_v0  ;;  %s2254_s30 = scalar_lea.vmem %s3259_s22, 1536  ;;  %p2261_p1 = scmp.lt.s32.totalorder %s3259_s22, %s2259_s6 }
  0x61   : > { %1981 = vmatprep.subr.bf16.mxu1 %v1980_v54  ;;  %2077 = vmatprep.subr.bf16.mxu0 %v2076_v57  ;;  %v768_v54 = vsub.f32 %v2850_v1, %v767_v27  ;;  %v579_v57 = vand.u32 4294901760, %v3008_v52  ;;  %v1986_v39 = vpack.c.bf16 %v650_v22, %v643_v11  ;;  %v591_v53 = vsub.f32 %v3020_v60, %v590_v10  ;;  %p2255_p12 = scmp.ne.s32.totalorder %s3259_s22, %s2254_s30  ;;  %p2262_p2 = scmp.lt.s32.totalorder %s2260_s8, %s2254_s30 }
  0x62   : > { %1846 = vmatprep.mubr.f32.mxu0 %v557_v56  ;;  %1714 = vmatprep.mubr.f32.mxu1 %v559_v38  ;;  %v3036_v0 = vsub.f32 %v2863_v19, %v3355_v63  ;;  %v267_v46 = vmul.f32 %v2696_v43, %v254_v51  ;;  %v669_v51 = vand.u32 4294901760, %v2884_v42 }
  0x63   : > { %1847 = vmatmul.mubr.f32.gmra.mrb[2].mxu0 %v557_v56  ;;  %v775_v56 = vsub.f32 %v2858_v32, %v774_v16  ;;  %1715 = vmatmul.mubr.f32.gmra.mrb[2].mxu1 %v559_v38  ;;  %v580_v5 = vsub.f32 %v3008_v52, %v579_v57  ;;  %v769_v41 = vand.u32 4294901760, %v768_v54  ;;  %p2256_p13 = pnand %p2255_p12, %p2402_p4  ;;  %p2263_p3 = por %p2262_p2, %p2261_p1 }
  0x64   : > { %1848 = vmatprep.mubr.f32.mxu0 %v568_v36  ;;  %1716 = vmatprep.mubr.f32.mxu1 %v570_v20  ;;  %v349_v63 = vsel %vm332_vm0, %v267_v46, 0  ;;  %v3408_v46 = vld [vmem:[#allocation26_spill] sm:$0xff]  ;;  %v657_v11 = vand.u32 4294901760, %v3036_v0  ;;  %v802_v0 = vand.u32 4294901760, %v2909_v13 }
  0x65   : > { %v581_v38 = vand.u32 4294901760, %v580_v5  ;;  %v776_v54 = vand.u32 4294901760, %v775_v56  ;;  %v788_v5 = vand.u32 4294901760, %v2879_v26  ;;  %v3055_v58 = vand.u32 4294901760, %v349_v63  ;;  %p2257_p0 = pneg %p2256_p13 }
  0x67   : > { %1849 = vmatmul.mubr.f32.gmra.mrb[4].mxu0 %v568_v36  ;;  %1717 = vmatmul.mubr.f32.gmra.mrb[4].mxu1 %v570_v20  ;;  %v3066_v56 = vsub.f32 %v349_v63, %v3055_v58  ;;  %v3405_v20 = vld [vmem:[#allocation22_spill] sm:$0xff]  ;;  %v3407_v63 = vld [vmem:[#allocation24_spill] sm:$0xff]  ;;  %v1988_v43 = vpack.c.bf16 %v776_v54, %v769_v41  ;;  %v2084_v36 = vpack.c.bf16 %v774_v16, %v767_v27  ;;  %v676_v27 = vand.u32 4294901760, %v2896_v59  ;;  %p2264_p5 = pnand %p2263_p3, %p2257_p0 }
  0x68   : > { %1983 = vmatpush3.bf16.xpose.msra.mxu1 %v1982_v3  ;;  %2079 = vmatpush3.bf16.xpose.msra.mxu0 %v2976_v8  ;;  %v663_v3 = vsub.f32 %v2868_v47, %v662_v21  ;;  %v789_v8 = vsub.f32 %v2879_v26, %v788_v5 }
  0x69   : > { %1985 = vmatprep.subr.bf16.mxu1 %v1984_v34  ;;  %2081 = vmatprep.subr.bf16.mxu0 %v2080_v44  ;;  %v592_v44 = vand.u32 4294901760, %v591_v53  ;;  %3404 = vst [vmem:[#allocation29_spill] sm:$0xff] %v3066_v56  ;;  %v782_v34 = vsub.f32 %v2873_v61, %v3356_v37  ;;  %v601_v22 = vand.u32 4294901760, %v3066_v56 }
  0x6a   : > { %1850 = vmatprep.mubr.f32.mxu0 %v579_v57  ;;  %1718 = vmatprep.mubr.f32.mxu1 %v581_v38  ;;  %v664_v41 = vand.u32 4294901760, %v663_v3  ;;  %v790_v16 = vand.u32 4294901760, %v789_v8  ;;  %v670_v3 = vsub.f32 %v2884_v42, %v669_v51 }
  0x6b   : > { %1851 = vmatmul.mubr.f32.gmra.mrb[6].mxu0 %v579_v57  ;;  %v3406_v57 = vld [vmem:[#allocation23_spill] sm:$0xff]  ;;  %1719 = vmatmul.mubr.f32.gmra.mrb[6].mxu1 %v581_v38  ;;  %v602_v53 = vsub.f32 %v3066_v56, %v601_v22  ;;  %v783_v54 = vand.u32 4294901760, %v782_v34  ;;  %v795_v38 = vand.u32 4294901760, %v2901_v9  ;;  %v3411_v34 = vand.u32 4294901760, %v2873_v61 }
  0x6c   : > { %1852 = vmatprep.mubr.f32.mxu0 %v590_v10  ;;  %1720 = vmatprep.mubr.f32.mxu1 %v592_v44 }
  0x6d   : > { %v603_v37 = vand.u32 4294901760, %v602_v53  ;;  %v1992_v8 = vpack.c.bf16 %v790_v16, %v783_v54  ;;  %v2088_v53 = vpack.c.bf16 %v788_v5, %v3411_v34  ;;  %v809_v5 = vand.u32 4294901760, %v2923_v50 }
  0x6e   : > { %v816_v34 = vand.u32 4294901760, %v2933_v6 }
  0x6f   : > { %1853 = vmatmul.mubr.f32.gmra.mrb[8].mxu0 %v590_v10  ;;  %1721 = vmatmul.mubr.f32.gmra.mrb[8].mxu1 %v592_v44  ;;  %v796_v44 = vsub.f32 %v2901_v9, %v795_v38 }
  0x70   : > { %1987 = vmatpush3.bf16.xpose.msra.mxu1 %v1986_v39  ;;  %2083 = vmatpush3.bf16.xpose.msra.mxu0 %v2998_v45  ;;  %v1990_v39 = vpack.c.bf16 %v664_v41, %v657_v11  ;;  %v3409_v45 = vand.u32 4294901760, %v2863_v19  ;;  %v683_v41 = vand.u32 4294901760, %v2914_v7  ;;  %v817_v52 = vsub.f32 %v2933_v6, %v816_v34 }
  0x71   : > { %1989 = vmatprep.subr.bf16.mxu1 %v1988_v43  ;;  %2085 = vmatprep.subr.bf16.mxu0 %v2084_v36  ;;  %v677_v43 = vsub.f32 %v2896_v59, %v676_v27  ;;  %v3410_v36 = vld [vmem:[#allocation16_spill] sm:$0xff]  ;;  %v797_v54 = vand.u32 4294901760, %v796_v44  ;;  %v697_v44 = vand.u32 4294901760, %v2935_v15 }
  0x72   : > { %1854 = vmatprep.mubr.f32.mxu0 %v601_v22  ;;  %1722 = vmatprep.mubr.f32.mxu1 %v603_v37  ;;  %v2086_v10 = vpack.c.bf16 %v662_v21, %v3409_v45  ;;  %v671_v21 = vand.u32 4294901760, %v670_v3  ;;  %v690_v45 = vand.u32 4294901760, %v2919_v12  ;;  %v684_v60 = vsub.f32 %v2914_v7, %v683_v41 }
  0x73   : > { %1855 = vmatmul.mubr.f32.gmra.mrb[10].mxu0 %v601_v22  ;;  %v803_v22 = vsub.f32 %v2909_v13, %v802_v0  ;;  %1723 = vmatmul.mubr.f32.gmra.mrb[10].mxu1 %v603_v37  ;;  %v678_v11 = vand.u32 4294901760, %v677_v43  ;;  %v2090_v37 = vpack.c.bf16 %v676_v27, %v669_v51  ;;  %v2092_v3 = vpack.c.bf16 %v802_v0, %v795_v38 }
  0x74   : > { %1888 = vmatprep.mubr.f32.mxu0 %v3410_v36  ;;  %1756 = vmatprep.mubr.f32.mxu1 %v3410_v36  ;;  %v810_v43 = vsub.f32 %v2923_v50, %v809_v5  ;;  %v818_v27 = vand.u32 4294901760, %v817_v52  ;;  %v830_v38 = vand.u32 4294901760, %v2948_v55 }
  0x75   : > { %v804_v16 = vand.u32 4294901760, %v803_v22  ;;  %v1994_v56 = vpack.c.bf16 %v678_v11, %v671_v21  ;;  %v704_v22 = vand.u32 4294901760, %v3405_v20  ;;  %v823_v21 = vand.u32 4294901760, %v3406_v57 }
  0x76   : > { %v811_v51 = vand.u32 4294901760, %v810_v43  ;;  %v2094_v11 = vpack.c.bf16 %v690_v45, %v683_v41  ;;  %v718_v43 = vand.u32 4294901760, %v3408_v46 }
  0x78   : > { %1991 = vmatpush3.bf16.xpose.msra.mxu1 %v1990_v39  ;;  %2087 = vmatpush3.bf16.xpose.msra.mxu0 %v2086_v10  ;;  %v691_v39 = vsub.f32 %v2919_v12, %v690_v45  ;;  %v1996_v10 = vpack.c.bf16 %v804_v16, %v797_v54  ;;  %v698_v54 = vsub.f32 %v2935_v15, %v697_v44 }
  0x79   : > { %1993 = vmatprep.subr.bf16.mxu1 %v1992_v8  ;;  %2089 = vmatprep.subr.bf16.mxu0 %v2088_v53  ;;  %v685_v8 = vand.u32 4294901760, %v684_v60  ;;  %v2000_v60 = vpack.c.bf16 %v818_v27, %v811_v51  ;;  %v2096_v16 = vpack.c.bf16 %v816_v34, %v809_v5  ;;  %v719_v34 = vsub.f32 %v3408_v46, %v718_v43 }
  0x7a   : > { %v692_v53 = vand.u32 4294901760, %v691_v39  ;;  %v831_v39 = vsub.f32 %v2948_v55, %v830_v38  ;;  %v2100_v27 = vpack.c.bf16 %v830_v38, %v823_v21  ;;  %v3416_v38 = vpack.c.bf16 %v2782_v18, %v2777_v14  ;;  %v3423_v18 = vld [vmem:[#allocation10_spill] sm:$0xff] }
  0x7b   : > { %v3422_v14 = vpack.c.bf16 %v2839_v40, %v2833_v25  ;;  %v3429_v25 = vpack.c.bf16 %v2879_v26, %v2873_v61  ;;  %v3430_v40 = vld [vmem:[#allocation13_spill] sm:$0xff]  ;;  %v3436_v61 = vld [vmem:[#allocation18_spill] sm:$0xff]  ;;  %v3437_v26 = vpack.c.bf16 %v2933_v6, %v2923_v50  ;;  %v3445_v6 = vld [vmem:[#allocation27_spill] sm:$0xff] }
  0x7c   : > { %v1998_v0 = vpack.c.bf16 %v692_v53, %v685_v8  ;;  %v832_v45 = vand.u32 4294901760, %v831_v39  ;;  %v2098_v53 = vpack.c.bf16 %v704_v22, %v697_v44  ;;  %v3413_v44 = vld [vmem:[#allocation5_spill] sm:$0xff]  ;;  %v3433_v39 = vpack.c.bf16 %v2909_v13, %v2901_v9  ;;  %v3440_v13 = vld [vmem:[#allocation20_spill] sm:$0xff] }
  0x7d   : > { %v3441_v9 = vpack.c.bf16 %v2948_v55, %v3406_v57  ;;  %v3444_v50 = vld [vmem:[#allocation25_spill] sm:$0xff] }
  0x7e   : > { %v3447_v55 = vld [vmem:[#allocation29_spill] sm:$0xff] }
  0x80   : > { %1995 = vmatpush3.bf16.xpose.msra.mxu1 %v1994_v56  ;;  %2091 = vmatpush3.bf16.xpose.msra.mxu0 %v2090_v37  ;;  %v705_v56 = vsub.f32 %v3405_v20, %v704_v22  ;;  %v824_v37 = vsub.f32 %v3406_v57, %v823_v21  ;;  %v3414_v22 = vpack.c.bf16 %v2772_v62, %v2767_v17  ;;  %v3415_v21 = vld [vmem:[#allocation6_spill] sm:$0xff]  ;;  %v3421_v17 = vld [vmem:[#allocation9_spill] sm:$0xff] }
  0x81   : > { %1997 = vmatprep.subr.bf16.mxu1 %v1996_v10  ;;  %2093 = vmatprep.subr.bf16.mxu0 %v2092_v3  ;;  %v699_v10 = vand.u32 4294901760, %v698_v54  ;;  %v711_v3 = vand.u32 4294901760, %v3407_v63  ;;  %v3418_v62 = vpack.c.bf16 %v2803_v24, %v2798_v23  ;;  %v3424_v23 = vpack.c.bf16 %v2858_v32, %v2850_v1  ;;  %v3425_v24 = vld [vmem:[#allocation11_spill] sm:$0xff]  ;;  %v3428_v1 = vld [vmem:[#allocation12_spill] sm:$0xff] }
  0x82   : > { %v706_v52 = vand.u32 4294901760, %v705_v56  ;;  %v825_v41 = vand.u32 4294901760, %v824_v37  ;;  %v3431_v32 = vpack.c.bf16 %v2896_v59, %v2884_v42  ;;  %v3432_v37 = vld [vmem:[#allocation14_spill] sm:$0xff]  ;;  %v3438_v42 = vld [vmem:[#allocation19_spill] sm:$0xff]  ;;  %v3439_v59 = vpack.c.bf16 %v3405_v20, %v2935_v15  ;;  %v3446_v15 = vld [vmem:[#allocation28_spill] sm:$0xff] }
  0x83   : > { %v712_v5 = vsub.f32 %v3407_v63, %v711_v3  ;;  %v2102_v56 = vpack.c.bf16 %v718_v43, %v711_v3 }
  0x84   : > { %v2002_v8 = vpack.c.bf16 %v706_v52, %v699_v10  ;;  %v2004_v51 = vpack.c.bf16 %v832_v45, %v825_v41 }
  0x88   : > { %1999 = vmatpush3.bf16.xpose.msra.mxu1 %v1998_v0  ;;  %2095 = vmatpush3.bf16.xpose.msra.mxu0 %v2094_v11  ;;  %v713_v0 = vand.u32 4294901760, %v712_v5  ;;  %v720_v11 = vand.u32 4294901760, %v719_v34 }
  0x89   : > { %2001 = vmatprep.subr.bf16.mxu1 %v2000_v60  ;;  %2097 = vmatprep.subr.bf16.mxu0 %v2096_v16  ;;  %v3412_v60 = vpack.c.bf16 %v2757_v4, %v2748_v2  ;;  %v3417_v16 = vld [vmem:[#allocation7_spill] sm:$0xff]  ;;  %v3419_v2 = vld [vmem:[#allocation8_spill] sm:$0xff]  ;;  %v3420_v4 = vpack.c.bf16 %v2820_v35, %v2808_v28  ;;  %v3426_v28 = vld [vmem:[#allocation17_spill] sm:$0xff]  ;;  %v3427_v35 = vpack.c.bf16 %v2868_v47, %v2863_v19 }
  0x8a   : > { %v2006_v54 = vpack.c.bf16 %v720_v11, %v713_v0  ;;  %v3434_v19 = vld [vmem:[#allocation15_spill] sm:$0xff]  ;;  %v3435_v47 = vpack.c.bf16 %v2919_v12, %v2914_v7  ;;  %v3442_v7 = vld [vmem:[#allocation21_spill] sm:$0xff]  ;;  %v3443_v12 = vpack.c.bf16 %v3408_v46, %v3407_v63 }
  0x90   : > { %2003 = vmatpush3.bf16.xpose.msra.mxu1 %v2002_v8  ;;  %2099 = vmatpush3.bf16.xpose.msra.mxu0 %v2098_v53 }
  0x91   : > { %2005 = vmatprep.subr.bf16.mxu1 %v2004_v51  ;;  %2101 = vmatprep.subr.bf16.mxu0 %v2100_v27 }
  0x98   : > { %2007 = vmatpush3.bf16.xpose.msra.mxu1 %v2006_v54  ;;  %2103 = vmatpush3.bf16.xpose.msra.mxu0 %v2102_v56 }
  0x99   : > { %2009 = vmatprep.subr.bf16.mxu1 %v3412_v60  ;;  %2105 = vmatprep.subr.bf16.mxu0 %v3413_v44 }
  0x9f   : > { %1757 = vmatmul.mubr.f32.vlgmr.msra.gmra.mrb[0].mxu1 %v3410_v36  ;;  %1889 = vmatmul.mubr.f32.vlgmr.msra.gmra.mrb[0].mxu0 %v3410_v36 }
  0xa0   : > { %2011 = vmatpush3.bf16.xpose.msra.mxu1 %v3414_v22  ;;  %2107 = vmatpush3.bf16.xpose.msra.mxu0 %v3415_v21 }
  0xa1   : > { %2013 = vmatprep.subr.bf16.mxu1 %v3416_v38  ;;  %2109 = vmatprep.subr.bf16.mxu0 %v3417_v16 }
  0xa2   : > { %1758 = vmatprep.mubr.f32.mxu1 %v2978_v49  ;;  %1890 = vmatprep.mubr.f32.mxu0 %v2978_v49 }
  0xa3   : > { %1759 = vmatmul.mubr.f32.gmra.mrb[2].mxu1 %v2978_v49  ;;  %1891 = vmatmul.mubr.f32.gmra.mrb[2].mxu0 %v2978_v49 }
  0xa4   : > { %1760 = vmatprep.mubr.f32.mxu1 %v2980_v48  ;;  %1892 = vmatprep.mubr.f32.mxu0 %v2980_v48 }
  0xa7   : > { %1761 = vmatmul.mubr.f32.gmra.mrb[4].mxu1 %v2980_v48  ;;  %1893 = vmatmul.mubr.f32.gmra.mrb[4].mxu0 %v2980_v48 }
  0xa8   : > { %2015 = vmatpush3.bf16.xpose.msra.mxu1 %v3418_v62  ;;  %2111 = vmatpush3.bf16.xpose.msra.mxu0 %v3419_v2 }
  0xa9   : > { %2017 = vmatprep.subr.bf16.mxu1 %v3420_v4  ;;  %2113 = vmatprep.subr.bf16.mxu0 %v3421_v17 }
  0xaa   : > { %1762 = vmatprep.mubr.f32.mxu1 %v3001_v29  ;;  %1894 = vmatprep.mubr.f32.mxu0 %v3001_v29 }
  0xab   : > { %1763 = vmatmul.mubr.f32.gmra.mrb[6].mxu1 %v3001_v29  ;;  %1895 = vmatmul.mubr.f32.gmra.mrb[6].mxu0 %v3001_v29 }
  0xac   : > { %1764 = vmatprep.mubr.f32.mxu1 %v3010_v31  ;;  %1896 = vmatprep.mubr.f32.mxu0 %v3010_v31 }
  0xaf   : > { %1765 = vmatmul.mubr.f32.gmra.mrb[8].mxu1 %v3010_v31  ;;  %1897 = vmatmul.mubr.f32.gmra.mrb[8].mxu0 %v3010_v31 }
  0xb0   : > { %2019 = vmatpush3.bf16.xpose.msra.mxu1 %v3422_v14  ;;  %2115 = vmatpush3.bf16.xpose.msra.mxu0 %v3423_v18 }
  0xb1   : > { %2021 = vmatprep.subr.bf16.mxu1 %v3424_v23  ;;  %2117 = vmatprep.subr.bf16.mxu0 %v3425_v24 }
  0xb2   : > { %1766 = vmatprep.mubr.f32.mxu1 %v3055_v58  ;;  %1898 = vmatprep.mubr.f32.mxu0 %v3055_v58 }
  0xb3   : > { %1767 = vmatmul.mubr.f32.gmra.mrb[10].mxu1 %v3055_v58  ;;  %1899 = vmatmul.mubr.f32.gmra.mrb[10].mxu0 %v3055_v58 }
  0xb4   : > { %1800 = vmatprep.mubr.f32.mxu1 %v3426_v28  ;;  %1932 = vmatprep.mubr.f32.mxu0 %v3410_v36 }
  0xb8   : > { %2023 = vmatpush3.bf16.xpose.msra.mxu1 %v3427_v35  ;;  %2119 = vmatpush3.bf16.xpose.msra.mxu0 %v3428_v1 }
  0xb9   : > { %2025 = vmatprep.subr.bf16.mxu1 %v3429_v25  ;;  %2121 = vmatprep.subr.bf16.mxu0 %v3430_v40 }
  0xc0   : > { %2027 = vmatpush3.bf16.xpose.msra.mxu1 %v3431_v32  ;;  %2123 = vmatpush3.bf16.xpose.msra.mxu0 %v3432_v37 }
  0xc1   : > { %2029 = vmatprep.subr.bf16.mxu1 %v3433_v39  ;;  %2125 = vmatprep.subr.bf16.mxu0 %v3434_v19 }
  0xc8   : > { %2031 = vmatpush3.bf16.xpose.msra.mxu1 %v3435_v47  ;;  %2127 = vmatpush3.bf16.xpose.msra.mxu0 %v3436_v61 }
  0xc9   : > { %2033 = vmatprep.subr.bf16.mxu1 %v3437_v26  ;;  %2129 = vmatprep.subr.bf16.mxu0 %v3438_v42 }
  0xd0   : > { %2035 = vmatpush3.bf16.xpose.msra.mxu1 %v3439_v59  ;;  %2131 = vmatpush3.bf16.xpose.msra.mxu0 %v3440_v13 }
  0xd1   : > { %2037 = vmatprep.subr.bf16.mxu1 %v3441_v9  ;;  %2133 = vmatprep.subr.bf16.mxu0 %v3442_v7 }
  0xd8   : > { %2039 = vmatpush3.bf16.xpose.msra.mxu1 %v3443_v12  ;;  %2135 = vmatpush3.bf16.xpose.msra.mxu0 %v3444_v50 }
  0xdf   : > { %1801 = vmatmul.mubr.f32.vlgmr.msra.gmra.mrb[0].mxu1 %v3426_v28  ;;  %1933 = vmatmul.mubr.f32.vlgmr.msra.gmra.mrb[0].mxu0 %v3410_v36 }
  0xe0   : > { %1802 = vmatprep.mubr.f32.mxu1 %v2984_v30  ;;  %1934 = vmatprep.mubr.f32.mxu0 %v2978_v49 }
  0xe3   : > { %1803 = vmatmul.mubr.f32.gmra.mrb[2].mxu1 %v2984_v30  ;;  %1935 = vmatmul.mubr.f32.gmra.mrb[2].mxu0 %v2978_v49 }
  0xe4   : > { %1804 = vmatprep.mubr.f32.mxu1 %v2987_v33  ;;  %1936 = vmatprep.mubr.f32.mxu0 %v2980_v48 }
  0xe7   : > { %1805 = vmatmul.mubr.f32.gmra.mrb[4].mxu1 %v2987_v33  ;;  %1937 = vmatmul.mubr.f32.gmra.mrb[4].mxu0 %v2980_v48 }
  0xe8   : > { %1806 = vmatprep.mubr.f32.mxu1 %v3445_v6  ;;  %1938 = vmatprep.mubr.f32.mxu0 %v3001_v29 }
  0xeb   : > { %1807 = vmatmul.mubr.f32.gmra.mrb[6].mxu1 %v3445_v6  ;;  %1939 = vmatmul.mubr.f32.gmra.mrb[6].mxu0 %v3001_v29 }
  0xec   : > { %1808 = vmatprep.mubr.f32.mxu1 %v3446_v15  ;;  %1940 = vmatprep.mubr.f32.mxu0 %v3010_v31 }
  0xef   : > { %1809 = vmatmul.mubr.f32.gmra.mrb[8].mxu1 %v3446_v15  ;;  %1941 = vmatmul.mubr.f32.gmra.mrb[8].mxu0 %v3010_v31 }
  0xf0   : > { %1810 = vmatprep.mubr.f32.mxu1 %v3447_v55  ;;  %1942 = vmatprep.mubr.f32.mxu0 %v3055_v58 }
  0xf3   : > { %1811 = vmatmul.mubr.f32.gmra.mrb[10].mxu1 %v3447_v55  ;;  %1943 = vmatmul.mubr.f32.gmra.mrb[10].mxu0 %v3055_v58 }
 0x1b2   : > { %v1009_v49 = vpop.f32.mrb[0].mxu1  ;;  %v1507_v30 = vpop.f32.mrb[0].mxu0 }
 0x1b3   : > { %v2136_v48 = vadd.f32 %v1507_v30, %v1009_v49  ;;  %v1011_v33 = vpop.f32.mrb[1].mxu1  ;;  %v1509_v29 = vpop.f32.mrb[1].mxu0 }
 0x1b4   : > { %v2137_v46 = vadd.f32 %v1509_v29, %v1011_v33 }
 0x1b5   : > { %1547 = vst [vmem:[%s3240_s14] sm:$0xff] %v2136_v48 }
 0x1b6   : > { %1548 = vst [vmem:[%s3240_s14 + $0x8] sm:$0xff] %v2137_v46  ;;  %v1017_v31 = vpop.f32.mrb[2].mxu1  ;;  %v1514_v58 = vpop.f32.mrb[2].mxu0 }
 0x1b7   : > { %v2138_v20 = vadd.f32 %v1514_v58, %v1017_v31  ;;  %v1019_v57 = vpop.f32.mrb[3].mxu1  ;;  %v1516_v63 = vpop.f32.mrb[3].mxu0 }
 0x1b8   : > { %v2139_v36 = vadd.f32 %v1516_v63, %v1019_v57 }
 0x1b9   : > { %1549 = vst [vmem:[%s3240_s14 + $0x10] sm:$0xff] %v2138_v20 }
 0x1ba   : > { %1550 = vst [vmem:[%s3240_s14 + $0x18] sm:$0xff] %v2139_v36  ;;  %v1025_v10 = vpop.f32.mrb[4].mxu1  ;;  %v1521_v52 = vpop.f32.mrb[4].mxu0 }
 0x1bb   : > { %v2140_v3 = vadd.f32 %v1521_v52, %v1025_v10  ;;  %v1027_v43 = vpop.f32.mrb[5].mxu1  ;;  %v1523_v41 = vpop.f32.mrb[5].mxu0 }
 0x1bc   : > { %v2141_v45 = vadd.f32 %v1523_v41, %v1027_v43 }
 0x1bd   : > { %1551 = vst [vmem:[%s3240_s14 + $0x20] sm:$0xff] %v2140_v3 }
 0x1be   : > { %1552 = vst [vmem:[%s3240_s14 + $0x28] sm:$0xff] %v2141_v45  ;;  %v1033_v8 = vpop.f32.mrb[6].mxu1  ;;  %v1528_v53 = vpop.f32.mrb[6].mxu0 }
 0x1bf   : > { %v2142_v5 = vadd.f32 %v1528_v53, %v1033_v8  ;;  %v1035_v34 = vpop.f32.mrb[7].mxu1  ;;  %v1530_v51 = vpop.f32.mrb[7].mxu0 }
 0x1c0   : > { %v2143_v27 = vadd.f32 %v1530_v51, %v1035_v34 }
 0x1c1   : > { %1553 = vst [vmem:[%s3240_s14 + $0x30] sm:$0xff] %v2142_v5 }
 0x1c2   : > { %1554 = vst [vmem:[%s3240_s14 + $0x38] sm:$0xff] %v2143_v27  ;;  %v1041_v0 = vpop.f32.mrb[8].mxu1  ;;  %v1535_v11 = vpop.f32.mrb[8].mxu0 }
 0x1c3   : > { %v2144_v54 = vadd.f32 %v1535_v11, %v1041_v0  ;;  %v1043_v56 = vpop.f32.mrb[9].mxu1  ;;  %v1537_v60 = vpop.f32.mrb[9].mxu0 }
 0x1c4   : > { %v2145_v44 = vadd.f32 %v1537_v60, %v1043_v56 }
 0x1c5   : > { %1555 = vst [vmem:[%s3240_s14 + $0x40] sm:$0xff] %v2144_v54 }
 0x1c6   : > { %1556 = vst [vmem:[%s3240_s14 + $0x48] sm:$0xff] %v2145_v44  ;;  %v1049_v22 = vpop.f32.mrb[10].mxu1  ;;  %v1542_v21 = vpop.f32.mrb[10].mxu0 }
 0x1c7   : > { %v2146_v38 = vadd.f32 %v1542_v21, %v1049_v22  ;;  %v1051_v16 = vpop.f32.mrb[11].mxu1  ;;  %v1544_v62 = vpop.f32.mrb[11].mxu0 }
 0x1c8   : > { %v2147_v2 = vadd.f32 %v1544_v62, %v1051_v16 }
 0x1c9   : > { %1557 = vst [vmem:[%s3240_s14 + $0x50] sm:$0xff] %v2146_v38 }
 0x1ca   : > { %1558 = vst [vmem:[%s3240_s14 + $0x58] sm:$0xff] %v2147_v2 }
 0x1cb   : > { %2267 = shalt.err (!%p2264_p5)
}
 0x1cc   : > { %s2268_s9 = scalar_lea.hbm %s3257_s29, 1536  ;;  %s2272_s12 = scalar_lea.hbm %s3315_s4, 3072 }
 0x1cd   : > { %p2269_p6 = scmp.ne.s32.totalorder %s3257_s29, %s2268_s9  ;;  %p2273_p10 = scmp.lt.u32.totalorder %s3257_s29, %s3315_s4 }
 0x1ce   : > { %p2274_p11 = scmp.lt.u32.totalorder %s2272_s12, %s2268_s9  ;;  %p2276_p13 = scmp.lt.u32.totalorder %s2268_s9, %s3257_s29 }
 0x1cf   : > { %p2270_p7 = pnand %p2269_p6, %p2402_p4 }
 0x1d0   : > { %p2275_p12 = por %p2274_p11, %p2273_p10 }
 0x1d1   : > { %p2271_p9 = pneg %p2270_p7 }
 0x1d2   : > { %p2277_p0 = por %p2276_p13, %p2275_p12 }
 0x1d4   : > { %p2278_p1 = pnand %p2277_p0, %p2271_p9 }
 0x1d6   : > { %2281 = shalt.err (!%p2278_p1)
}
 0x1d7   : > { %s2335_s14 = smov 256   ;;  %s2336_s21 = smov 16  }
 0x1d8   : > { %2197 = dma.vmem_to_hbm [thread:$0]  (%p2402_p4), %s3259_s22, 1536, %s3257_s29, %s3265_s18, %s2335_s14, %s2335_s14, %s2336_s21  }
 0x1d9 PF: > { %p2203_p2 = scmp.ge.s32.totalorder %s2332_s20, 2  ;;  %s1591_s24 = sand.u32 1, %s2312_s15  }
 0x1da   : > { %s1592_s26 = scalar_lea.sflag [#allocation3], %s1591_s24 }
 0x1db   : > { %p2200_p3 = pnand %p2203_p2, %p2409_p8 }
 0x1dd   : > { %2307 = dma.done.wait (!%p2200_p3), %s1592_s26, 1536  }
 0x1de   : > { %2309 = vsyncadd (!%p2200_p3), %s1592_s26, 4294965760  ;;  %s17_s20 = sadd.s32 1, %s2332_s20   ;;  %s3448_s15 = smov %s2316_s16 }
 0x1df   : > { %p14_p5 = scmp.ge.s32.totalorder %s17_s20, 4   ;;  %s3449_s16 = smov %s2320_s17 }
 0x1e0   : > { %s3450_s17 = smov %s2415_s28  ;;  %s3451_s18 = smov %s2328_s19 }
 0x1e1   : > { %s3452_s19 = smov %s3454_s23  ;;  %16 = sbr.rel (!%p14_p5) target bundleno = 4 (0x4), region = 74 }
 0x1e8   :  { %1597 = vsyncpa [#allocation3], 1 }
 0x1e9   :  { %1599 = vsyncpa [#allocation3 + $0x1], 1 }

</bundles_post_ra>
